<compile_context>
chip_gen: v7x
topology: tpu7x:2x2x1
jax: 0.10.0
libtpu: 0.0.40
codegen_flags: <defaults>
</compile_context>

<pallas_src>
import functools

import jax
import jax.numpy as jnp
import numpy as np
from jax.experimental import pallas as pl
from jax.experimental.pallas import tpu as pltpu

HP = 128                             # hidden width padded from 64 -> 128
VMEM_LIMIT = 48 * 1024 * 1024        # fits v7x (64 MiB physical) with headroom


def _round_up(x, m):
    return ((x + m - 1) // m) * m


# --------------------------------------------------------------------------
# Kernel 1: per-layer precompute  [Y|Z] = X @ [Wrel | Wroot]  (one wide matmul)
# --------------------------------------------------------------------------
def _xw_kernel(x_ref, w_ref, y_ref, z_ref):
    """x_ref: (TILE_N, F) f32; w_ref: (F, 2*HP) f32 (resident);
    y_ref: (TILE_N, HP) bf16 (= X@Wrel); z_ref: (TILE_N, HP) f32 (= X@Wroot)."""
    yz = jnp.dot(x_ref[...], w_ref[...], preferred_element_type=jnp.float32)
    y_ref[...] = yz[:, :HP].astype(y_ref.dtype)
    z_ref[...] = yz[:, HP:].astype(z_ref.dtype)


def xw_precompute(x, w_stacked, *, tile_n):
    Np, F = x.shape
    return pl.pallas_call(
        _xw_kernel,
        out_shape=(jax.ShapeDtypeStruct((Np, HP), jnp.bfloat16),
                   jax.ShapeDtypeStruct((Np, HP), jnp.float32)),
        grid_spec=pltpu.PrefetchScalarGridSpec(
            num_scalar_prefetch=0,
            grid=(Np // tile_n,),
            in_specs=[
                pl.BlockSpec((tile_n, F), lambda i: (i, 0)),       # X row tile
                pl.BlockSpec((F, 2 * HP), lambda i: (0, 0)),       # stacked weights
            ],
            out_specs=(pl.BlockSpec((tile_n, HP), lambda i: (i, 0)),
                       pl.BlockSpec((tile_n, HP), lambda i: (i, 0))),
        ),
        compiler_params=pltpu.CompilerParams(
            dimension_semantics=("parallel",),
            vmem_limit_bytes=VMEM_LIMIT,
        ),
    )(x, w_stacked)


# --------------------------------------------------------------------------
# Kernel 2: fused GraphConv + ReLU   h_tile = ReLU(A_tile @ Y + Z_tile)
# --------------------------------------------------------------------------
def _graphconv_relu_kernel(a_ref, y_ref, z_ref, o_ref):
    """a_ref: (TILE_N, Np) bf16 adjacency row tile (streamed);
    y_ref: (Np, HP) bf16 (resident); z_ref: (TILE_N, HP) f32 (streamed);
    o_ref: (TILE_N, HP) f32."""
    acc = jnp.dot(a_ref[...], y_ref[...], preferred_element_type=jnp.float32)
    o_ref[...] = jnp.maximum(acc + z_ref[...], 0.0).astype(o_ref.dtype)


def graphconv_relu(adj_bf16, y_bf16, z_f32, *, tile_n):
    Np = adj_bf16.shape[0]
    return pl.pallas_call(
        _graphconv_relu_kernel,
        out_shape=jax.ShapeDtypeStruct((Np, HP), jnp.float32),
        grid_spec=pltpu.PrefetchScalarGridSpec(
            num_scalar_prefetch=0,
            grid=(Np // tile_n,),
            in_specs=[
                pl.BlockSpec((tile_n, Np), lambda i: (i, 0)),      # A row tile
                pl.BlockSpec((Np, HP), lambda i: (0, 0)),          # Y (resident)
                pl.BlockSpec((tile_n, HP), lambda i: (i, 0)),      # Z row tile
            ],
            out_specs=pl.BlockSpec((tile_n, HP), lambda i: (i, 0)),
        ),
        compiler_params=pltpu.CompilerParams(
            dimension_semantics=("parallel",),
            vmem_limit_bytes=VMEM_LIMIT,
        ),
    )(adj_bf16, y_bf16, z_f32)


# --------------------------------------------------------------------------
# Kernel 3: last GraphConv fused with mean-pool + Linear + Softmax head.
# --------------------------------------------------------------------------
def _graphconv_pool_head_kernel(a_ref, y_ref, z_ref, p_ref, wfc_ref, bfc_ref,
                                o_ref, acc_ref):
    """Per-graph pooled features accumulate in VMEM; h3 never touches HBM.

    a_ref:   (TILE_N, Np) bf16 ; y_ref: (Np, HP) bf16 (resident)
    z_ref:   (TILE_N, HP) f32  ; p_ref: (GP, TILE_N) f32 mean-pool column tile
    wfc_ref: (HP, T) f32 (rows >=64 are zero padding) ; bfc_ref: (1, T) f32
    o_ref:   (GP, T) f32 softmax probabilities ; acc_ref: (GP, HP) f32 scratch
    """
    step = pl.program_id(0)

    @pl.when(step == 0)
    def _():
        acc_ref[...] = jnp.zeros_like(acc_ref)

    h = jnp.dot(a_ref[...], y_ref[...], preferred_element_type=jnp.float32)
    h = jnp.maximum(h + z_ref[...], 0.0)
    acc_ref[...] += jnp.dot(p_ref[...], h, preferred_element_type=jnp.float32)

    @pl.when(step == pl.num_programs(0) - 1)
    def _():
        logits = jnp.dot(acc_ref[...], wfc_ref[...],
                         preferred_element_type=jnp.float32) + bfc_ref[...]
        m = jnp.max(logits, axis=-1, keepdims=True)
        e = jnp.exp(logits - m)
        o_ref[...] = (e / jnp.sum(e, axis=-1, keepdims=True)).astype(o_ref.dtype)


def graphconv_pool_head(adj_bf16, y_bf16, z_f32, pool, w_fc, b_fc, *, tile_n):
    Np = adj_bf16.shape[0]
    GP = pool.shape[0]
    T = w_fc.shape[1]
    return pl.pallas_call(
        _graphconv_pool_head_kernel,
        out_shape=jax.ShapeDtypeStruct((GP, T), jnp.float32),
        grid_spec=pltpu.PrefetchScalarGridSpec(
            num_scalar_prefetch=0,
            grid=(Np // tile_n,),
            in_specs=[
                pl.BlockSpec((tile_n, Np), lambda i: (i, 0)),      # A row tile
                pl.BlockSpec((Np, HP), lambda i: (0, 0)),          # Y (resident)
                pl.BlockSpec((tile_n, HP), lambda i: (i, 0)),      # Z row tile
                pl.BlockSpec((GP, tile_n), lambda i: (0, i)),      # pool col tile
                pl.BlockSpec((HP, T), lambda i: (0, 0)),           # fc weight
                pl.BlockSpec((1, T), lambda i: (0, 0)),            # fc bias
            ],
            out_specs=pl.BlockSpec((GP, T), lambda i: (0, 0)),
            scratch_shapes=[pltpu.VMEM((GP, HP), jnp.float32)],
        ),
        compiler_params=pltpu.CompilerParams(
            dimension_semantics=("arbitrary",),   # reduction into pooled acc
            vmem_limit_bytes=VMEM_LIMIT,
        ),
    )(adj_bf16, y_bf16, z_f32, pool, w_fc, b_fc.reshape(1, T))


# --------------------------------------------------------------------------
# Full Classifier forward (plain-JAX glue: dense A / pool matrix, weight pad).
# --------------------------------------------------------------------------
def classifier_forward(x, edge_index, batch, params, *, num_graphs, tile_n=256):
    N = x.shape[0]
    # tile_n is forced to a multiple of 128 so every streamed block (including
    # the (G, tile_n) pool tile) is lane-dense; node count is padded to a tile
    # multiple. For large graphs the grid naturally has >= 2 steps (v7x 2-TC).
    tile_n = max(128, (min(tile_n, 512) // 128) * 128)
    Np = _round_up(N, tile_n)
    GP = _round_up(max(num_graphs, 1), 8)

    # Dense adjacency (sum aggregation at target), bf16: exact for counts <= 256.
    src, dst = edge_index[0], edge_index[1]
    adj = jnp.zeros((Np, Np), jnp.float32).at[dst, src].add(1.0)
    adj = adj.astype(jnp.bfloat16)

    # Mean-pool matrix: P[g, i] = 1/|graph g| if batch[i] == g else 0.
    onehot = (batch[None, :] == jnp.arange(GP)[:, None]).astype(jnp.float32)
    counts = jnp.sum(onehot, axis=1, keepdims=True)
    pool = onehot / jnp.maximum(counts, 1.0)
    pool = jnp.pad(pool, ((0, 0), (0, Np - N)))

    # fc weight rows padded 64 -> HP (padded hidden columns are always zero).
    w_fc = jnp.pad(params["w_fc"],
                   ((0, HP - params["w_fc"].shape[0]), (0, 0))).astype(jnp.float32)
    b_fc = params["b_fc"].astype(jnp.float32)

    h = jnp.pad(x.astype(jnp.float32), ((0, Np - N), (0, 0)))

    n_layers = len(params["gcn"])
    probs = None
    for li, (w_rel, w_root) in enumerate(params["gcn"]):
        cin, cout = w_rel.shape
        cin_p = HP if li > 0 else cin          # previous layer already padded to HP
        w_rel_p = jnp.pad(w_rel, ((0, cin_p - cin), (0, HP - cout)))
        w_root_p = jnp.pad(w_root, ((0, cin_p - cin), (0, HP - cout)))
        w_stacked = jnp.concatenate([w_rel_p, w_root_p], axis=1).astype(jnp.float32)

        y, z = xw_precompute(h, w_stacked, tile_n=tile_n)
        if li < n_layers - 1:
            h = graphconv_relu(adj, y, z, tile_n=tile_n)
        else:
            probs = graphconv_pool_head(adj, y, z, pool, w_fc, b_fc, tile_n=tile_n)

    return probs[0]   # softmax(...)[0] in the PyTorch module


# --------------------------------------------------------------------------
# Plain-JAX reference (sparse message passing via indexed adds).
# --------------------------------------------------------------------------
def _reference(x, edge_index, batch, params, num_graphs):
    src, dst = edge_index[0], edge_index[1]
    h = x.astype(jnp.float32)
    with jax.default_matmul_precision("highest"):
        for w_rel, w_root in params["gcn"]:
            agg = jnp.zeros_like(h).at[dst].add(h[src])
            h = jnp.maximum(agg @ w_rel + h @ w_root, 0.0)
        sums = jnp.zeros((num_graphs, h.shape[1]), jnp.float32).at[batch].add(h)
        cnts = jnp.zeros((num_graphs, 1), jnp.float32).at[batch].add(1.0)
        pooled = sums / jnp.maximum(cnts, 1.0)
        logits = pooled @ params["w_fc"] + params["b_fc"]
    return jax.nn.softmax(logits, axis=-1)[0]


if __name__ == "__main__":
    # Small shapes consistent with Classifier(type_num=5, features=8).
    N, F_IN, HIDDEN, TYPE_NUM, NUM_GRAPHS, E = 16, 8, 64, 5, 2, 40

    key = jax.random.PRNGKey(0)
    k_x, k_e, k_w = jax.random.split(key, 3)
    x = jax.random.normal(k_x, (N, F_IN), dtype=jnp.float32)
    edge_index = jax.random.randint(k_e, (2, E), 0, N, dtype=jnp.int32)
    batch = jnp.concatenate([jnp.zeros(N // 2, jnp.int32),
                             jnp.ones(N - N // 2, jnp.int32)])

    dims = [(F_IN, HIDDEN), (HIDDEN, HIDDEN), (HIDDEN, HIDDEN)]
    keys = jax.random.split(k_w, 2 * len(dims) + 2)
    gcn = []
    for li, (cin, cout) in enumerate(dims):
        w_rel = jax.random.normal(keys[2 * li], (cin, cout), jnp.float32) / np.sqrt(cin)
        w_root = jax.random.normal(keys[2 * li + 1], (cin, cout), jnp.float32) / np.sqrt(cin)
        gcn.append((w_rel, w_root))
    w_fc = jax.random.normal(keys[-2], (HIDDEN, TYPE_NUM), jnp.float32) / np.sqrt(HIDDEN)
    b_fc = jax.random.normal(keys[-1], (TYPE_NUM,), jnp.float32) * 0.1
    params = {"gcn": gcn, "w_fc": w_fc, "b_fc": b_fc}

    out = classifier_forward(x, edge_index, batch, params, num_graphs=NUM_GRAPHS)
    out = jax.block_until_ready(out)

    ref = _reference(x, edge_index, batch, params, NUM_GRAPHS)
    # Kernel path uses bf16 adjacency / bf16 Y operands with f32 accumulation.
    np.testing.assert_allclose(np.asarray(out), np.asarray(ref),
                               rtol=5e-2, atol=1e-2)
    print("KERNEL_OK")
</pallas_src>

<mosaic_0001>
module attributes {stable_mosaic.version = 11 : i64} {
  func.func @_xw_kernel(%arg0: i32, %arg1: memref<256x8xf32, #tpu.memory_space<vmem>>, %arg2: memref<8x256xf32, #tpu.memory_space<vmem>>, %arg3: memref<256x128xbf16, #tpu.memory_space<vmem>>, %arg4: memref<256x128xf32, #tpu.memory_space<vmem>>) attributes {dimension_semantics = [#tpu.dimension_semantics<parallel>], iteration_bounds = array<i64: 1>, scalar_prefetch = 0 : i64, scratch_operands = 0 : i64, tpu.core_type = #tpu.core_type<tc>, window_params = [{transform_indices = @transform_0, window_bounds = array<i64: 256, 8>}, {pipeline_mode = #tpu.pipeline_mode<synchronous>, transform_indices = @transform_1, window_bounds = array<i64: 8, 256>}, {transform_indices = @transform_2, window_bounds = array<i64: 256, 128>}, {transform_indices = @transform_3, window_bounds = array<i64: 256, 128>}]} {
    %c0 = arith.constant 0 : index
    %c0_0 = arith.constant 0 : index
    %0 = vector.load %arg1[%c0, %c0_0] : memref<256x8xf32, #tpu.memory_space<vmem>>, vector<256x8xf32>
    %c0_1 = arith.constant 0 : index
    %c0_2 = arith.constant 0 : index
    %1 = vector.load %arg2[%c0_1, %c0_2] : memref<8x256xf32, #tpu.memory_space<vmem>>, vector<8x256xf32>
    %cst = arith.constant dense<0.000000e+00> : vector<256x256xf32>
    %2 = tpu.matmul %0, %1, %cst {dimension_numbers = #tpu.dot_dimension_numbers<[1], [0], [0], [1], [0, 0, 1, 1], [], []>} : vector<256x8xf32>, vector<8x256xf32>, vector<256x256xf32> -> vector<256x256xf32>
    %3 = vector.extract_strided_slice %2 {offsets = [0, 0], sizes = [256, 128], strides = [1, 1]} : vector<256x256xf32> to vector<256x128xf32>
    %4 = arith.truncf %3 : vector<256x128xf32> to vector<256x128xbf16>
    %c0_3 = arith.constant 0 : index
    %c0_4 = arith.constant 0 : index
    %5 = vector.load %arg3[%c0_3, %c0_4] : memref<256x128xbf16, #tpu.memory_space<vmem>>, vector<256x128xbf16>
    tpu.vector_store %arg3[%c0_3, %c0_4], %4 {strides = array<i32>} : memref<256x128xbf16, #tpu.memory_space<vmem>>, vector<256x128xbf16>,
    %6 = vector.extract_strided_slice %2 {offsets = [0, 128], sizes = [256, 128], strides = [1, 1]} : vector<256x256xf32> to vector<256x128xf32>
    %c0_5 = arith.constant 0 : index
    %c0_6 = arith.constant 0 : index
    %7 = vector.load %arg4[%c0_5, %c0_6] : memref<256x128xf32, #tpu.memory_space<vmem>>, vector<256x128xf32>
    tpu.vector_store %arg4[%c0_5, %c0_6], %6 {strides = array<i32>} : memref<256x128xf32, #tpu.memory_space<vmem>>, vector<256x128xf32>,
    return
  }
  func.func @transform_0(%arg0: i32) -> (i32, i32) {
    %c0_i32 = arith.constant 0 : i32
    %c0_i32_0 = arith.constant 0 : i32
    return %arg0, %c0_i32 : i32, i32
  }
  func.func @transform_1(%arg0: i32) -> (i32, i32) {
    %c0_i32 = arith.constant 0 : i32
    %c0_i32_0 = arith.constant 0 : i32
    %c0_i32_1 = arith.constant 0 : i32
    return %c0_i32, %c0_i32_0 : i32, i32
  }
  func.func @transform_2(%arg0: i32) -> (i32, i32) {
    %c0_i32 = arith.constant 0 : i32
    %c0_i32_0 = arith.constant 0 : i32
    return %arg0, %c0_i32 : i32, i32
  }
  func.func @transform_3(%arg0: i32) -> (i32, i32) {
    %c0_i32 = arith.constant 0 : i32
    %c0_i32_0 = arith.constant 0 : i32
    return %arg0, %c0_i32 : i32, i32
  }
}

</mosaic_0001>

<bundles_post_ra>
// kernel: tpu_custom_call.1
= control target key start
LH: loop header
LB: loop body
LE: loop exit
PB: predicated region body
PF: predicated region fallthrough
CT: control target
= control target key end

     0   :  { %9 = vsyncpa [#allocation3], 0  ;;  %vm49_vm0 = vcmask 64512   ;;  %v875_v4 = vmov 0.0   ;;  %s1099_s0 = inlined_call_operand.vmem [shape: f32[256,8], index: 0, kind: input, shape index: {}]   ;;  %s1100_s1 = inlined_call_operand.vmem [shape: f32[8,256], index: 1, kind: input, shape index: {}]   ;;  %s1101_s2 = inlined_call_operand.hbm [shape: bf16[256,128], index: 2, kind: output, shape index: {0}]   ;;  %s1102_s3 = inlined_call_operand.hbm [shape: f32[256,128], index: 3, kind: output, shape index: {1}]  }
   0x1   :  { %v48_v0 = vld [vmem:[%s1100_s1 + $0x8] sm:$0xff]  ;;  %v47_v1 = vld [vmem:[%s1100_s1] sm:$0xff]  ;;  %210 = vmatprep.mubr.f32.mxu0 %v875_v4  ;;  %306 = vmatprep.mubr.f32.mxu1 %v875_v4  ;;  %v17_v7 = vld [vmem:[%s1099_s0 + $0x10] sm:$0xff] }
   0x2   :  { %146 = vmatprep.subr.mxu0 %v48_v0  ;;  %818 = vmatprep.subr.mxu1 %v48_v0  ;;  %v15_v2 = vld [vmem:[%s1099_s0] sm:$0xff]  ;;  %v16_v5 = vld [vmem:[%s1099_s0 + $0x8] sm:$0xff]  ;;  %v33_v8 = vld [vmem:[%s1099_s0 + $0x90] sm:$0xff] }
   0x3   :  { %v31_v3 = vld [vmem:[%s1099_s0 + $0x80] sm:$0xff]  ;;  %147 = vmatpush1.msra.mxu0 %v47_v1  ;;  %819 = vmatpush1.msra.mxu1 %v47_v1  ;;  %v32_v6 = vld [vmem:[%s1099_s0 + $0x88] sm:$0xff] }
   0x4   :  { %627 = vmatmul.mubr.msk.f32.vlgmr.msra.gmra.mrb[0].mxu0 %vm49_vm0, %v15_v2  ;;  %643 = vmatmul.mubr.msk.f32.vlgmr.msra.gmra.mrb[0].mxu1 %vm49_vm0, %v31_v3 }
   0x5   :  { %216 = vmatprep.mubr.f32.mxu0 %v875_v4  ;;  %312 = vmatprep.mubr.f32.mxu1 %v875_v4 }
   0x8   :  { %628 = vmatmul.mubr.msk.f32.gmra.mrb[2].mxu0 %vm49_vm0, %v16_v5  ;;  %644 = vmatmul.mubr.msk.f32.gmra.mrb[2].mxu1 %vm49_vm0, %v32_v6 }
   0x9   :  { %222 = vmatprep.mubr.f32.mxu0 %v875_v4  ;;  %318 = vmatprep.mubr.f32.mxu1 %v875_v4 }
   0xa   :  { %10 = vsyncpa [#allocation5], 0  ;;  %v18_v9 = vld [vmem:[%s1099_s0 + $0x18] sm:$0xff]  ;;  %v19_v11 = vld [vmem:[%s1099_s0 + $0x20] sm:$0xff]  ;;  %s877_s24 = smov [#allocation4]  }
   0xb   :  { %v34_v10 = vld [vmem:[%s1099_s0 + $0x98] sm:$0xff]  ;;  %v35_v12 = vld [vmem:[%s1099_s0 + $0xa0] sm:$0xff]  ;;  %v20_v13 = vld [vmem:[%s1099_s0 + $0x28] sm:$0xff]  ;;  %s612_s25 = sshll.u32 %s877_s24, 4  ;;  %s613_s25 = int_to_ptr.vmem [resolvable:$true] %s612_s25 }
   0xc   :  { %629 = vmatmul.mubr.msk.f32.gmra.mrb[4].mxu0 %vm49_vm0, %v17_v7  ;;  %645 = vmatmul.mubr.msk.f32.gmra.mrb[4].mxu1 %vm49_vm0, %v33_v8  ;;  %v36_v14 = vld [vmem:[%s1099_s0 + $0xa8] sm:$0xff]  ;;  %v21_v15 = vld [vmem:[%s1099_s0 + $0x30] sm:$0xff]  ;;  %v22_v17 = vld [vmem:[%s1099_s0 + $0x38] sm:$0xff]  ;;  %s827_s26 = scalar_lea.vmem %s613_s25, 4096  ;;  %p832_p1 = scmp.lt.s32.totalorder %s613_s25, %s613_s25 }
   0xd   :  { %228 = vmatprep.mubr.f32.mxu0 %v875_v4  ;;  %324 = vmatprep.mubr.f32.mxu1 %v875_v4  ;;  %v37_v16 = vld [vmem:[%s1099_s0 + $0xb0] sm:$0xff]  ;;  %v38_v18 = vld [vmem:[%s1099_s0 + $0xb8] sm:$0xff]  ;;  %v23_v19 = vld [vmem:[%s1099_s0 + $0x40] sm:$0xff]  ;;  %p828_p0 = scmp.ne.s32.totalorder %s613_s25, %s827_s26  ;;  %p833_p2 = scmp.lt.s32.totalorder %s827_s26, %s827_s26 }
   0xe   :  { %v39_v20 = vld [vmem:[%s1099_s0 + $0xc0] sm:$0xff]  ;;  %v24_v21 = vld [vmem:[%s1099_s0 + $0x48] sm:$0xff]  ;;  %v25_v23 = vld [vmem:[%s1099_s0 + $0x50] sm:$0xff] }
   0xf   :  { %v40_v22 = vld [vmem:[%s1099_s0 + $0xc8] sm:$0xff]  ;;  %v41_v24 = vld [vmem:[%s1099_s0 + $0xd0] sm:$0xff]  ;;  %v26_v25 = vld [vmem:[%s1099_s0 + $0x58] sm:$0xff]  ;;  %p834_p3 = por %p833_p2, %p832_p1 }
  0x10   :  { %630 = vmatmul.mubr.msk.f32.gmra.mrb[6].mxu0 %vm49_vm0, %v18_v9  ;;  %646 = vmatmul.mubr.msk.f32.gmra.mrb[6].mxu1 %vm49_vm0, %v34_v10  ;;  %v42_v26 = vld [vmem:[%s1099_s0 + $0xd8] sm:$0xff]  ;;  %v27_v27 = vld [vmem:[%s1099_s0 + $0x60] sm:$0xff]  ;;  %v28_v29 = vld [vmem:[%s1099_s0 + $0x68] sm:$0xff] }
  0x11   :  { %234 = vmatprep.mubr.f32.mxu0 %v875_v4  ;;  %330 = vmatprep.mubr.f32.mxu1 %v875_v4  ;;  %v43_v28 = vld [vmem:[%s1099_s0 + $0xe0] sm:$0xff]  ;;  %v44_v30 = vld [vmem:[%s1099_s0 + $0xe8] sm:$0xff]  ;;  %v29_v31 = vld [vmem:[%s1099_s0 + $0x70] sm:$0xff]  ;;  %p835_p4 = pnand %p834_p3, %p828_p0 }
  0x12   :  { %v45_v32 = vld [vmem:[%s1099_s0 + $0xf0] sm:$0xff]  ;;  %v30_v33 = vld [vmem:[%s1099_s0 + $0x78] sm:$0xff] }
  0x13   :  { %v46_v34 = vld [vmem:[%s1099_s0 + $0xf8] sm:$0xff]  ;;  %s876_s0 = smov [#allocation2]  }
  0x14   :  { %631 = vmatmul.mubr.msk.f32.gmra.mrb[8].mxu0 %vm49_vm0, %v19_v11  ;;  %647 = vmatmul.mubr.msk.f32.gmra.mrb[8].mxu1 %vm49_vm0, %v35_v12  ;;  %s600_s23 = sshll.u32 %s876_s0, 4  ;;  %s1068_s23 = int_to_ptr.vmem [resolvable:$true] %s600_s23 }
  0x15   :  { %240 = vmatprep.mubr.f32.mxu0 %v875_v4  ;;  %336 = vmatprep.mubr.f32.mxu1 %v875_v4 }
  0x18   :  { %632 = vmatmul.mubr.msk.f32.gmra.mrb[10].mxu0 %vm49_vm0, %v20_v13  ;;  %648 = vmatmul.mubr.msk.f32.gmra.mrb[10].mxu1 %vm49_vm0, %v36_v14 }
  0x19   :  { %246 = vmatprep.mubr.f32.mxu0 %v875_v4  ;;  %342 = vmatprep.mubr.f32.mxu1 %v875_v4 }
  0x1c   :  { %633 = vmatmul.mubr.msk.f32.gmra.mrb[12].mxu0 %vm49_vm0, %v21_v15  ;;  %649 = vmatmul.mubr.msk.f32.gmra.mrb[12].mxu1 %vm49_vm0, %v37_v16 }
  0x1d   :  { %252 = vmatprep.mubr.f32.mxu0 %v875_v4  ;;  %348 = vmatprep.mubr.f32.mxu1 %v875_v4 }
  0x20   :  { %634 = vmatmul.mubr.msk.f32.gmra.mrb[14].mxu0 %vm49_vm0, %v22_v17  ;;  %650 = vmatmul.mubr.msk.f32.gmra.mrb[14].mxu1 %vm49_vm0, %v38_v18 }
  0x21   :  { %258 = vmatprep.mubr.f32.mxu0 %v875_v4  ;;  %354 = vmatprep.mubr.f32.mxu1 %v875_v4 }
  0x24   :  { %635 = vmatmul.mubr.msk.f32.gmra.mrb[16].mxu0 %vm49_vm0, %v23_v19  ;;  %651 = vmatmul.mubr.msk.f32.gmra.mrb[16].mxu1 %vm49_vm0, %v39_v20 }
  0x25   :  { %264 = vmatprep.mubr.f32.mxu0 %v875_v4  ;;  %360 = vmatprep.mubr.f32.mxu1 %v875_v4 }
  0x28   :  { %636 = vmatmul.mubr.msk.f32.gmra.mrb[18].mxu0 %vm49_vm0, %v24_v21  ;;  %652 = vmatmul.mubr.msk.f32.gmra.mrb[18].mxu1 %vm49_vm0, %v40_v22 }
  0x29   :  { %270 = vmatprep.mubr.f32.mxu0 %v875_v4  ;;  %366 = vmatprep.mubr.f32.mxu1 %v875_v4 }
  0x2c   :  { %637 = vmatmul.mubr.msk.f32.gmra.mrb[20].mxu0 %vm49_vm0, %v25_v23  ;;  %653 = vmatmul.mubr.msk.f32.gmra.mrb[20].mxu1 %vm49_vm0, %v41_v24 }
  0x2d   :  { %276 = vmatprep.mubr.f32.mxu0 %v875_v4  ;;  %372 = vmatprep.mubr.f32.mxu1 %v875_v4 }
  0x30   :  { %638 = vmatmul.mubr.msk.f32.gmra.mrb[22].mxu0 %vm49_vm0, %v26_v25  ;;  %654 = vmatmul.mubr.msk.f32.gmra.mrb[22].mxu1 %vm49_vm0, %v42_v26 }
  0x31   :  { %282 = vmatprep.mubr.f32.mxu0 %v875_v4  ;;  %378 = vmatprep.mubr.f32.mxu1 %v875_v4 }
  0x34   :  { %639 = vmatmul.mubr.msk.f32.gmra.mrb[24].mxu0 %vm49_vm0, %v27_v27  ;;  %655 = vmatmul.mubr.msk.f32.gmra.mrb[24].mxu1 %vm49_vm0, %v43_v28 }
  0x35   :  { %288 = vmatprep.mubr.f32.mxu0 %v875_v4  ;;  %384 = vmatprep.mubr.f32.mxu1 %v875_v4 }
  0x38   :  { %640 = vmatmul.mubr.msk.f32.gmra.mrb[26].mxu0 %vm49_vm0, %v28_v29  ;;  %656 = vmatmul.mubr.msk.f32.gmra.mrb[26].mxu1 %vm49_vm0, %v44_v30 }
  0x39   :  { %294 = vmatprep.mubr.f32.mxu0 %v875_v4  ;;  %390 = vmatprep.mubr.f32.mxu1 %v875_v4 }
  0x3c   :  { %641 = vmatmul.mubr.msk.f32.gmra.mrb[28].mxu0 %vm49_vm0, %v29_v31  ;;  %657 = vmatmul.mubr.msk.f32.gmra.mrb[28].mxu1 %vm49_vm0, %v45_v32 }
  0x3d   :  { %300 = vmatprep.mubr.f32.mxu0 %v875_v4  ;;  %396 = vmatprep.mubr.f32.mxu1 %v875_v4 }
  0x40   :  { %642 = vmatmul.mubr.msk.f32.gmra.mrb[30].mxu0 %vm49_vm0, %v30_v33  ;;  %658 = vmatmul.mubr.msk.f32.gmra.mrb[30].mxu1 %vm49_vm0, %v46_v34 }
  0xd7   :  { %v212_v35 = vpop.f32.mrb[0].mxu0  ;;  %v308_v36 = vpop.f32.mrb[0].mxu1 }
  0xd8   :  { %v214_v37 = vpop.f32.mrb[1].mxu0  ;;  %v310_v38 = vpop.f32.mrb[1].mxu1 }
  0xd9   :  { %563 = vst [vmem:[#allocation4] sm:$0xff] %v214_v37  ;;  %579 = vst [vmem:[#allocation4 + $0x80] sm:$0xff] %v310_v38 }
  0xdb   :  { %v218_v39 = vpop.f32.mrb[2].mxu0  ;;  %v314_v40 = vpop.f32.mrb[2].mxu1 }
  0xdc   :  { %v726_v41 = vpack.c.bf16 %v218_v39, %v212_v35  ;;  %v766_v42 = vpack.c.bf16 %v314_v40, %v308_v36  ;;  %v220_v43 = vpop.f32.mrb[3].mxu0  ;;  %v316_v44 = vpop.f32.mrb[3].mxu1 }
  0xdd   :  { %564 = vst [vmem:[#allocation4 + $0x8] sm:$0xff] %v220_v43  ;;  %580 = vst [vmem:[#allocation4 + $0x88] sm:$0xff] %v316_v44 }
  0xde   :  { %727 = vst [vmem:[#allocation2] sm:$0xff] %v726_v41   ;;  %810 = vst [vmem:[#allocation2 + $0x40] sm:$0xff] %v766_v42  }
  0xdf   :  { %v224_v45 = vpop.f32.mrb[4].mxu0  ;;  %v320_v46 = vpop.f32.mrb[4].mxu1 }
  0xe0   :  { %v226_v47 = vpop.f32.mrb[5].mxu0  ;;  %v322_v48 = vpop.f32.mrb[5].mxu1 }
  0xe1   :  { %565 = vst [vmem:[#allocation4 + $0x10] sm:$0xff] %v226_v47  ;;  %581 = vst [vmem:[#allocation4 + $0x90] sm:$0xff] %v322_v48 }
  0xe3   :  { %v230_v49 = vpop.f32.mrb[6].mxu0  ;;  %v326_v50 = vpop.f32.mrb[6].mxu1 }
  0xe4   :  { %v731_v51 = vpack.c.bf16 %v230_v49, %v224_v45  ;;  %v771_v52 = vpack.c.bf16 %v326_v50, %v320_v46  ;;  %v232_v53 = vpop.f32.mrb[7].mxu0  ;;  %v328_v54 = vpop.f32.mrb[7].mxu1 }
  0xe5   :  { %566 = vst [vmem:[#allocation4 + $0x18] sm:$0xff] %v232_v53  ;;  %582 = vst [vmem:[#allocation4 + $0x98] sm:$0xff] %v328_v54 }
  0xe6   :  { %803 = vst [vmem:[#allocation2 + $0x8] sm:$0xff] %v731_v51   ;;  %811 = vst [vmem:[#allocation2 + $0x48] sm:$0xff] %v771_v52  }
  0xe7   :  { %v236_v55 = vpop.f32.mrb[8].mxu0  ;;  %v332_v56 = vpop.f32.mrb[8].mxu1 }
  0xe8   :  { %v238_v57 = vpop.f32.mrb[9].mxu0  ;;  %v334_v58 = vpop.f32.mrb[9].mxu1 }
  0xe9   :  { %567 = vst [vmem:[#allocation4 + $0x20] sm:$0xff] %v238_v57  ;;  %583 = vst [vmem:[#allocation4 + $0xa0] sm:$0xff] %v334_v58 }
  0xeb   :  { %v242_v59 = vpop.f32.mrb[10].mxu0  ;;  %v338_v60 = vpop.f32.mrb[10].mxu1 }
  0xec   :  { %v736_v61 = vpack.c.bf16 %v242_v59, %v236_v55  ;;  %v776_v62 = vpack.c.bf16 %v338_v60, %v332_v56  ;;  %v244_v63 = vpop.f32.mrb[11].mxu0  ;;  %v340_v0 = vpop.f32.mrb[11].mxu1 }
  0xed   :  { %568 = vst [vmem:[#allocation4 + $0x28] sm:$0xff] %v244_v63  ;;  %584 = vst [vmem:[#allocation4 + $0xa8] sm:$0xff] %v340_v0 }
  0xee   :  { %804 = vst [vmem:[#allocation2 + $0x10] sm:$0xff] %v736_v61   ;;  %812 = vst [vmem:[#allocation2 + $0x50] sm:$0xff] %v776_v62  }
  0xef   :  { %v248_v1 = vpop.f32.mrb[12].mxu0  ;;  %v344_v2 = vpop.f32.mrb[12].mxu1 }
  0xf0   :  { %v250_v3 = vpop.f32.mrb[13].mxu0  ;;  %v346_v4 = vpop.f32.mrb[13].mxu1 }
  0xf1   :  { %569 = vst [vmem:[#allocation4 + $0x30] sm:$0xff] %v250_v3  ;;  %585 = vst [vmem:[#allocation4 + $0xb0] sm:$0xff] %v346_v4 }
  0xf3   :  { %v254_v5 = vpop.f32.mrb[14].mxu0  ;;  %v350_v6 = vpop.f32.mrb[14].mxu1 }
  0xf4   :  { %v741_v7 = vpack.c.bf16 %v254_v5, %v248_v1  ;;  %v781_v8 = vpack.c.bf16 %v350_v6, %v344_v2  ;;  %v256_v9 = vpop.f32.mrb[15].mxu0  ;;  %v352_v10 = vpop.f32.mrb[15].mxu1 }
  0xf5   :  { %570 = vst [vmem:[#allocation4 + $0x38] sm:$0xff] %v256_v9  ;;  %586 = vst [vmem:[#allocation4 + $0xb8] sm:$0xff] %v352_v10 }
  0xf6   :  { %805 = vst [vmem:[#allocation2 + $0x18] sm:$0xff] %v741_v7   ;;  %813 = vst [vmem:[#allocation2 + $0x58] sm:$0xff] %v781_v8  }
  0xf7   :  { %v260_v11 = vpop.f32.mrb[16].mxu0  ;;  %v356_v12 = vpop.f32.mrb[16].mxu1 }
  0xf8   :  { %v262_v13 = vpop.f32.mrb[17].mxu0  ;;  %v358_v14 = vpop.f32.mrb[17].mxu1 }
  0xf9   :  { %571 = vst [vmem:[#allocation4 + $0x40] sm:$0xff] %v262_v13  ;;  %587 = vst [vmem:[#allocation4 + $0xc0] sm:$0xff] %v358_v14 }
  0xfb   :  { %v266_v15 = vpop.f32.mrb[18].mxu0  ;;  %v362_v16 = vpop.f32.mrb[18].mxu1 }
  0xfc   :  { %v746_v17 = vpack.c.bf16 %v266_v15, %v260_v11  ;;  %v786_v18 = vpack.c.bf16 %v362_v16, %v356_v12  ;;  %v268_v19 = vpop.f32.mrb[19].mxu0  ;;  %v364_v20 = vpop.f32.mrb[19].mxu1 }
  0xfd   :  { %572 = vst [vmem:[#allocation4 + $0x48] sm:$0xff] %v268_v19  ;;  %588 = vst [vmem:[#allocation4 + $0xc8] sm:$0xff] %v364_v20 }
  0xfe   :  { %806 = vst [vmem:[#allocation2 + $0x20] sm:$0xff] %v746_v17   ;;  %814 = vst [vmem:[#allocation2 + $0x60] sm:$0xff] %v786_v18  }
  0xff   :  { %v272_v21 = vpop.f32.mrb[20].mxu0  ;;  %v368_v22 = vpop.f32.mrb[20].mxu1 }
 0x100   :  { %v274_v23 = vpop.f32.mrb[21].mxu0  ;;  %v370_v24 = vpop.f32.mrb[21].mxu1 }
 0x101   :  { %573 = vst [vmem:[#allocation4 + $0x50] sm:$0xff] %v274_v23  ;;  %589 = vst [vmem:[#allocation4 + $0xd0] sm:$0xff] %v370_v24 }
 0x103   :  { %v278_v25 = vpop.f32.mrb[22].mxu0  ;;  %v374_v26 = vpop.f32.mrb[22].mxu1 }
 0x104   :  { %v751_v27 = vpack.c.bf16 %v278_v25, %v272_v21  ;;  %v791_v28 = vpack.c.bf16 %v374_v26, %v368_v22  ;;  %v280_v29 = vpop.f32.mrb[23].mxu0  ;;  %v376_v30 = vpop.f32.mrb[23].mxu1 }
 0x105   :  { %574 = vst [vmem:[#allocation4 + $0x58] sm:$0xff] %v280_v29  ;;  %590 = vst [vmem:[#allocation4 + $0xd8] sm:$0xff] %v376_v30 }
 0x106   :  { %807 = vst [vmem:[#allocation2 + $0x28] sm:$0xff] %v751_v27   ;;  %815 = vst [vmem:[#allocation2 + $0x68] sm:$0xff] %v791_v28  }
 0x107   :  { %v284_v31 = vpop.f32.mrb[24].mxu0  ;;  %v380_v32 = vpop.f32.mrb[24].mxu1 }
 0x108   :  { %v286_v33 = vpop.f32.mrb[25].mxu0  ;;  %v382_v34 = vpop.f32.mrb[25].mxu1 }
 0x109   :  { %575 = vst [vmem:[#allocation4 + $0x60] sm:$0xff] %v286_v33  ;;  %591 = vst [vmem:[#allocation4 + $0xe0] sm:$0xff] %v382_v34 }
 0x10b   :  { %v290_v35 = vpop.f32.mrb[26].mxu0  ;;  %v386_v36 = vpop.f32.mrb[26].mxu1 }
 0x10c   :  { %v756_v37 = vpack.c.bf16 %v290_v35, %v284_v31  ;;  %v796_v38 = vpack.c.bf16 %v386_v36, %v380_v32  ;;  %v292_v39 = vpop.f32.mrb[27].mxu0  ;;  %v388_v40 = vpop.f32.mrb[27].mxu1 }
 0x10d   :  { %576 = vst [vmem:[#allocation4 + $0x68] sm:$0xff] %v292_v39  ;;  %592 = vst [vmem:[#allocation4 + $0xe8] sm:$0xff] %v388_v40 }
 0x10e   :  { %808 = vst [vmem:[#allocation2 + $0x30] sm:$0xff] %v756_v37   ;;  %816 = vst [vmem:[#allocation2 + $0x70] sm:$0xff] %v796_v38  }
 0x10f   :  { %v296_v41 = vpop.f32.mrb[28].mxu0  ;;  %v392_v42 = vpop.f32.mrb[28].mxu1 }
 0x110   :  { %v298_v43 = vpop.f32.mrb[29].mxu0  ;;  %v394_v44 = vpop.f32.mrb[29].mxu1 }
 0x111   :  { %577 = vst [vmem:[#allocation4 + $0x70] sm:$0xff] %v298_v43  ;;  %593 = vst [vmem:[#allocation4 + $0xf0] sm:$0xff] %v394_v44 }
 0x113   :  { %v302_v45 = vpop.f32.mrb[30].mxu0  ;;  %v398_v46 = vpop.f32.mrb[30].mxu1 }
 0x114   :  { %v761_v47 = vpack.c.bf16 %v302_v45, %v296_v41  ;;  %v801_v48 = vpack.c.bf16 %v398_v46, %v392_v42  ;;  %v304_v49 = vpop.f32.mrb[31].mxu0  ;;  %v400_v50 = vpop.f32.mrb[31].mxu1 }
 0x115   :  { %578 = vst [vmem:[#allocation4 + $0x78] sm:$0xff] %v304_v49  ;;  %594 = vst [vmem:[#allocation4 + $0xf8] sm:$0xff] %v400_v50 }
 0x116   :  { %809 = vst [vmem:[#allocation2 + $0x38] sm:$0xff] %v761_v47   ;;  %817 = vst [vmem:[#allocation2 + $0x78] sm:$0xff] %v801_v48  }
 0x117   :  { %838 = shalt.err (!%p835_p4)
}
 0x118   :  { %s839_s29 = scalar_lea.hbm %s1102_s3, 4096 }
 0x119   :  { %p840_p5 = scmp.ne.s32.totalorder %s1102_s3, %s839_s29  ;;  %p843_p6 = scmp.lt.u32.totalorder %s839_s29, %s1102_s3 }
 0x11b   :  { %p845_p7 = pnand %p843_p6, %p840_p5 }
 0x11d   :  { %848 = shalt.err (!%p845_p7)
}
 0x11e   :  { %s878_s7 = smov 128   ;;  %s879_s8 = smov 8  }
 0x11f   :  { %618 = dma.vmem_to_hbm [thread:$0]  %s613_s25, 4096, %s1102_s3, [#allocation5], %s878_s7, %s878_s7, %s879_s8  }
 0x120   :  { %s849_s11 = scalar_lea.vmem %s1068_s23, 2048  ;;  %p854_p9 = scmp.lt.s32.totalorder %s1068_s23, %s1068_s23 }
 0x121   :  { %p850_p8 = scmp.ne.s32.totalorder %s1068_s23, %s849_s11  ;;  %p855_p10 = scmp.lt.s32.totalorder %s849_s11, %s849_s11 }
 0x123   :  { %p856_p11 = por %p855_p10, %p854_p9 }
 0x125   :  { %p857_p12 = pnand %p856_p11, %p850_p8 }
 0x127   :  { %860 = shalt.err (!%p857_p12)
}
 0x128   :  { %s861_s14 = scalar_lea.hbm %s1101_s2, 2048 }
 0x129   :  { %p862_p13 = scmp.ne.s32.totalorder %s1101_s2, %s861_s14  ;;  %p865_p0 = scmp.lt.u32.totalorder %s861_s14, %s1101_s2 }
 0x12b   :  { %p867_p1 = pnand %p865_p0, %p862_p13 }
 0x12d   :  { %870 = shalt.err (!%p867_p1)
}
 0x12e   :  { %s880_s3 = smov 64   ;;  %s881_s19 = smov 4  }
 0x12f   :  { %606 = dma.vmem_to_hbm [thread:$0]  %s1068_s23, 2048, %s1101_s2, [#allocation3], %s880_s3, %s880_s3, %s881_s19  }
 0x130   :  { %871 = dma.done.wait [#allocation3], 2048  }
 0x131   :  { %872 = vsyncadd [#allocation3], 4294965248 }
 0x132   :  { %873 = dma.done.wait [#allocation5], 4096  }
 0x133   :  { %874 = vsyncadd [#allocation5], 4294963200 }
 0x134   :  { %625 = vsyncpa [#allocation3], 1 }
 0x135   :  { %626 = vsyncpa [#allocation5], 1 }

</bundles_post_ra>
